<compile_context>
chip_gen: v5e
topology: v5e:2x2
jax: 0.10.0
libtpu: 0.0.40
codegen_flags: <defaults>
</compile_context>

<pallas_src>
import functools

import numpy as np
import jax
import jax.numpy as jnp
from jax import lax
from jax.experimental import pallas as pl
from jax.experimental.pallas import tpu as pltpu


def _spectrum_kernel(x_ref, cs_ref, fd_ref, sm_ref, pk_ref, *,
                     channels, f_pad, n_bins, taps, pad):
    """Per-batch-tile hot path: rfft power spectrum (fused DFT matmul),
    channel mean, Gaussian smoothing via rolls, local-max peak flags."""
    bt = x_ref.shape[0]
    L = x_ref.shape[2]

    # rfft via one fused [cos | -sin] DFT matmul on the MXU.
    # (imag sign matches rfft's exp(-i...); only |X|^2 is consumed anyway.)
    x2 = x_ref[...].reshape(bt * channels, L)
    ri = jnp.dot(x2, cs_ref[...], preferred_element_type=jnp.float32)  # (bt*C, 2*f_pad)
    re = ri[:, :f_pad]
    im = ri[:, f_pad:]
    fd = re * re
    fd = fd + im * im                                                  # |X|^2
    fd3 = fd.reshape(bt, channels, f_pad)
    fd_ref[...] = fd3

    # mean over channels: sublane/XLU reduction (no averaging matmul).
    fm = jnp.sum(fd3, axis=1) * (1.0 / channels)                       # (bt, f_pad)

    idx = lax.broadcasted_iota(jnp.int32, (bt, f_pad), 1)
    # keep rfft bins [1, L//2) (reference's f_[:, 1:L//2] slice); zeros outside
    # also provide the conv1d zero padding at the slice boundaries.
    fmask = jnp.where((idx >= 1) & (idx <= n_bins), fm, 0.0)

    # Gaussian smoothing: k-tap conv as XLU lane-rolls + VPU multiply-adds.
    sm = jnp.zeros_like(fmask)
    for t, g in enumerate(taps):
        shift = (pad - t) % f_pad
        term = fmask if shift == 0 else pltpu.roll(fmask, shift=shift, axis=1)
        sm = sm + float(g) * term
    sm_ref[...] = sm

    # peaks: diff[j-1] > 0 and diff[j] < 0  <=>  strict local maximum.
    nb_a = pltpu.roll(sm, shift=1, axis=1)           # neighbour on one side
    nb_b = pltpu.roll(sm, shift=f_pad - 1, axis=1)   # neighbour on the other
    pk = (sm > nb_a) & (sm > nb_b) & (idx >= 2) & (idx <= n_bins - 1)
    pk_ref[...] = pk.astype(jnp.float32)


class DynamicAnchorLayer:
    def __init__(self, kernel_size=3, sigma=2, n_peaks=3, min_peak_distance=3,
                 num_channels=32, signal_length=500, fs=128):
        self.kernel_size = kernel_size
        self.sigma = float(sigma)
        self.n_peaks = n_peaks
        self.min_peak_distance = float(min_peak_distance)
        self.num_channels = num_channels
        self.signal_length = signal_length
        self.fs = float(fs)

        L = signal_length
        self.F = L // 2 + 1            # rfft bins
        self.N = L // 2 - 1            # bins kept after the [1 : L//2) slice
        self.pad = kernel_size // 2

        # lane-dense padded frequency width: multiple of 128 with halo slack so
        # circular rolls never wrap garbage into the valid bin range.
        self.F_pad = int(np.ceil((self.F + self.pad) / 128.0)) * 128

        # fused DFT basis  [cos | -sin]  zero-padded to F_pad lanes each.
        n = np.arange(L, dtype=np.float64)[:, None]
        k = np.arange(self.F, dtype=np.float64)[None, :]
        ang = 2.0 * np.pi * n * k / L
        cs = np.zeros((L, 2 * self.F_pad), dtype=np.float32)
        cs[:, :self.F] = np.cos(ang)
        cs[:, self.F_pad:self.F_pad + self.F] = -np.sin(ang)
        self.cs = jnp.asarray(cs)                                      # (L, 2*F_pad)

        freqs_full = np.arange(self.F, dtype=np.float32) * self.fs / L
        self.freqs = jnp.asarray(freqs_full[1:L // 2])                 # (N,)

        # Gaussian taps (matches torch.arange(-ks//2+1, ks//2+1)) -> closed over
        # as compile-time constants; no kernel input needed.
        kk = np.arange(-kernel_size // 2 + 1, kernel_size // 2 + 1, dtype=np.float32)
        gk = np.exp(-kk ** 2 / (2.0 * self.sigma ** 2))
        self.gk = (gk / gk.sum()).astype(np.float32)

    def __call__(self, x, rng_key=None):
        C, L, F, N, Fp = self.num_channels, self.signal_length, self.F, self.N, self.F_pad
        x = jnp.asarray(x, jnp.float32).reshape(-1, C, L)
        B = x.shape[0]

        # batch tile: 8 batches (~256 rows of (B*C, L) at C=32) when tiling;
        # a single full-dim tile for small B (keeps BlockSpec tiling legal).
        Bt = B if B <= 8 else 8
        n_tiles = pl.cdiv(B, Bt)
        B_pad = n_tiles * Bt
        if B_pad != B:
            x = jnp.pad(x, ((0, B_pad - B), (0, 0), (0, 0)))

        kern = functools.partial(
            _spectrum_kernel, channels=C, f_pad=Fp, n_bins=N,
            taps=tuple(float(g) for g in self.gk), pad=self.pad)

        fd_full, sm_full, pk_full = pl.pallas_call(
            kern,
            grid=(n_tiles,),
            out_shape=(
                jax.ShapeDtypeStruct((B_pad, C, Fp), jnp.float32),
                jax.ShapeDtypeStruct((B_pad, Fp), jnp.float32),
                jax.ShapeDtypeStruct((B_pad, Fp), jnp.float32),
            ),
            in_specs=[
                pl.BlockSpec((Bt, C, L), lambda i: (i, 0, 0)),
                pl.BlockSpec((L, 2 * Fp), lambda i: (0, 0)),   # resident DFT basis
            ],
            out_specs=(
                pl.BlockSpec((Bt, C, Fp), lambda i: (i, 0, 0)),
                pl.BlockSpec((Bt, Fp), lambda i: (i, 0)),
                pl.BlockSpec((Bt, Fp), lambda i: (i, 0)),
            ),
            compiler_params=pltpu.CompilerParams(
                dimension_semantics=("parallel",),
                vmem_limit_bytes=32 * 1024 * 1024,
            ),
        )(x, self.cs)

        f_d = fd_full[:B, :, :F]                       # (B, C, F) power spectrum
        smoothed = sm_full[:B, 1:N + 1]                # (B, N)
        peaks = pk_full[:B, 1:N + 1] > 0.5             # (B, N) bool

        # ---- data-dependent peak selection (XLA glue on small tensors) ----
        sorted_indices = jnp.argsort(-smoothed, axis=1)                # descending magnitude
        sorted_peaks = jnp.take_along_axis(peaks, sorted_indices, axis=1)
        sorted_freq = jnp.take_along_axis(
            jnp.broadcast_to(self.freqs, (B, N)), sorted_indices, axis=1)

        # min-distance mask vs ALL higher-magnitude entries (matches the torch
        # loop). The (B, N, N) broadcast fuses into the all() reduction in XLA,
        # so it is never materialized in HBM.
        diffs = jnp.abs(sorted_freq[:, :, None] - sorted_freq[:, None, :])
        j_lt_i = jnp.arange(N)[None, :] < jnp.arange(N)[:, None]
        mask = jnp.all((diffs > self.min_peak_distance) | (~j_lt_i)[None], axis=2)

        valid = sorted_peaks & mask
        csum = jnp.cumsum(valid.astype(jnp.float32), axis=1)
        top_n = (csum <= self.n_peaks) & valid
        num_selected = jnp.sum(top_n, axis=1)                          # (B,)

        pos = jnp.argsort(jnp.where(top_n, jnp.arange(N)[None, :], N), axis=1)[:, :self.n_peaks]
        sel_idx = jnp.take_along_axis(sorted_indices, pos, axis=1)     # (B, n_peaks)
        freq_sel = self.freqs[sel_idx]

        # TODO(synk): torch fills missing peak slots with torch.randint under
        # manual_seed(8989); replicated with a deterministic jax.random draw.
        if rng_key is None:
            rng_key = jax.random.PRNGKey(8989)
        rand_idx = jax.random.randint(rng_key, (B, self.n_peaks), 0, N)
        freq_rand = self.freqs[rand_idx]

        slot_ok = jnp.arange(self.n_peaks)[None, :] < num_selected[:, None]
        peak_frequencies = jnp.where(slot_ok, freq_sel, freq_rand)     # (B, 3)

        # ---- anchor assembly ----
        xs = jnp.sort(peak_frequencies, axis=-1)
        cut1 = (xs[:, 1] - xs[:, 0]) / 2.0 + xs[:, 0]
        cut2 = (xs[:, 2] - xs[:, 1]) / 2.0 + xs[:, 1]
        low_low = jnp.full((B,), 0.5, jnp.float32)
        hig_hig = jnp.full((B,), 45.0, jnp.float32)
        anchors = jnp.stack([low_low, cut1, cut1, cut2, cut2, hig_hig], axis=1)
        anchors = anchors.reshape(B, 3, 2)

        return anchors, f_d


if __name__ == "__main__":
    B, C, L, FS = 2, 4, 64, 128
    layer = DynamicAnchorLayer(kernel_size=3, sigma=2, n_peaks=3,
                               min_peak_distance=3, num_channels=C,
                               signal_length=L, fs=FS)
    key = jax.random.PRNGKey(0)
    x = jax.random.normal(key, (B, C, L), dtype=jnp.float32)

    anchors, f_d = layer(x)
    jax.block_until_ready((anchors, f_d))

    assert anchors.shape == (B, 3, 2), anchors.shape
    assert f_d.shape == (B, C, L // 2 + 1), f_d.shape
    assert bool(jnp.all(jnp.isfinite(anchors))) and bool(jnp.all(jnp.isfinite(f_d)))
    print("KERNEL_OK")
</pallas_src>

<mosaic_0001>
module attributes {stable_mosaic.version = 11 : i64} {
  func.func @_spectrum_kernel(%arg0: i32, %arg1: memref<2x4x64xf32, #tpu.memory_space<vmem>>, %arg2: memref<64x256xf32, #tpu.memory_space<vmem>>, %arg3: memref<2x4x128xf32, #tpu.memory_space<vmem>>, %arg4: memref<2x128xf32, #tpu.memory_space<vmem>>, %arg5: memref<2x128xf32, #tpu.memory_space<vmem>>) attributes {dimension_semantics = [#tpu.dimension_semantics<parallel>], iteration_bounds = array<i64: 1>, scalar_prefetch = 0 : i64, scratch_operands = 0 : i64, tpu.core_type = #tpu.core_type<tc>, window_params = [{transform_indices = @transform_0, window_bounds = array<i64: 2, 4, 64>}, {pipeline_mode = #tpu.pipeline_mode<synchronous>, transform_indices = @transform_1, window_bounds = array<i64: 64, 256>}, {transform_indices = @transform_2, window_bounds = array<i64: 2, 4, 128>}, {transform_indices = @transform_3, window_bounds = array<i64: 2, 128>}, {transform_indices = @transform_4, window_bounds = array<i64: 2, 128>}]} {
    %c0 = arith.constant 0 : index
    %c0_0 = arith.constant 0 : index
    %c0_1 = arith.constant 0 : index
    %0 = vector.load %arg1[%c0, %c0_0, %c0_1] : memref<2x4x64xf32, #tpu.memory_space<vmem>>, vector<2x4x64xf32>
    %1 = vector.shape_cast %0 : vector<2x4x64xf32> to vector<8x64xf32>
    %c0_2 = arith.constant 0 : index
    %c0_3 = arith.constant 0 : index
    %2 = vector.load %arg2[%c0_2, %c0_3] : memref<64x256xf32, #tpu.memory_space<vmem>>, vector<64x256xf32>
    %cst = arith.constant dense<0.000000e+00> : vector<8x256xf32>
    %3 = tpu.matmul %1, %2, %cst {dimension_numbers = #tpu.dot_dimension_numbers<[1], [0], [0], [1], [0, 0, 1, 1], [], []>} : vector<8x64xf32>, vector<64x256xf32>, vector<8x256xf32> -> vector<8x256xf32>
    %4 = vector.extract_strided_slice %3 {offsets = [0, 0], sizes = [8, 128], strides = [1, 1]} : vector<8x256xf32> to vector<8x128xf32>
    %5 = vector.extract_strided_slice %3 {offsets = [0, 128], sizes = [8, 128], strides = [1, 1]} : vector<8x256xf32> to vector<8x128xf32>
    %6 = arith.mulf %4, %4 : vector<8x128xf32>
    %7 = arith.mulf %5, %5 : vector<8x128xf32>
    %8 = arith.addf %6, %7 : vector<8x128xf32>
    %9 = vector.shape_cast %8 : vector<8x128xf32> to vector<2x4x128xf32>
    %c0_4 = arith.constant 0 : index
    %c0_5 = arith.constant 0 : index
    %c0_6 = arith.constant 0 : index
    %10 = vector.load %arg3[%c0_4, %c0_5, %c0_6] : memref<2x4x128xf32, #tpu.memory_space<vmem>>, vector<2x4x128xf32>
    tpu.vector_store %arg3[%c0_4, %c0_5, %c0_6], %9 {strides = array<i32>} : memref<2x4x128xf32, #tpu.memory_space<vmem>>, vector<2x4x128xf32>,
    %cst_7 = arith.constant dense<0.000000e+00> : vector<2x128xf32>
    %11 = vector.multi_reduction <add>, %9, %cst_7 [1] : vector<2x4x128xf32> to vector<2x128xf32>
    %cst_8 = arith.constant 2.500000e-01 : f32
    %12 = vector.broadcast %cst_8 : f32 to vector<2x128xf32>
    %13 = arith.mulf %11, %12 : vector<2x128xf32>
    %14 = tpu.iota {dimensions = array<i32: 1>} : vector<2x128xi32>
    %c1_i32 = arith.constant 1 : i32
    %15 = vector.broadcast %c1_i32 : i32 to vector<2x128xi32>
    %16 = arith.cmpi sge, %14, %15 : vector<2x128xi32>
    %c31_i32 = arith.constant 31 : i32
    %17 = vector.broadcast %c31_i32 : i32 to vector<2x128xi32>
    %18 = arith.cmpi sle, %14, %17 : vector<2x128xi32>
    %19 = arith.andi %16, %18 : vector<2x128xi1>
    %cst_9 = arith.constant 0.000000e+00 : f32
    %20 = vector.broadcast %cst_9 : f32 to vector<2x128xf32>
    %21 = arith.select %19, %13, %20 : vector<2x128xi1>, vector<2x128xf32>
    %cst_10 = arith.constant 0.000000e+00 : f32
    %22 = vector.broadcast %cst_10 : f32 to vector<2x128xf32>
    %c1_i32_11 = arith.constant 1 : i32
    %23 = tpu.dynamic_rotate %21 by %c1_i32_11 dim 1 : vector<2x128xf32>, i32 -> vector<2x128xf32>
    %cst_12 = arith.constant 0.319167793 : f32
    %24 = vector.broadcast %cst_12 : f32 to vector<2x128xf32>
    %25 = arith.mulf %24, %23 : vector<2x128xf32>
    %26 = arith.addf %22, %25 : vector<2x128xf32>
    %cst_13 = arith.constant 0.361664474 : f32
    %27 = vector.broadcast %cst_13 : f32 to vector<2x128xf32>
    %28 = arith.mulf %27, %21 : vector<2x128xf32>
    %29 = arith.addf %26, %28 : vector<2x128xf32>
    %c127_i32 = arith.constant 127 : i32
    %30 = tpu.dynamic_rotate %21 by %c127_i32 dim 1 : vector<2x128xf32>, i32 -> vector<2x128xf32>
    %cst_14 = arith.constant 0.319167793 : f32
    %31 = vector.broadcast %cst_14 : f32 to vector<2x128xf32>
    %32 = arith.mulf %31, %30 : vector<2x128xf32>
    %33 = arith.addf %29, %32 : vector<2x128xf32>
    %c0_15 = arith.constant 0 : index
    %c0_16 = arith.constant 0 : index
    %34 = vector.load %arg4[%c0_15, %c0_16] : memref<2x128xf32, #tpu.memory_space<vmem>>, vector<2x128xf32>
    tpu.vector_store %arg4[%c0_15, %c0_16], %33 {strides = array<i32>} : memref<2x128xf32, #tpu.memory_space<vmem>>, vector<2x128xf32>,
    %c1_i32_17 = arith.constant 1 : i32
    %35 = tpu.dynamic_rotate %33 by %c1_i32_17 dim 1 : vector<2x128xf32>, i32 -> vector<2x128xf32>
    %c127_i32_18 = arith.constant 127 : i32
    %36 = tpu.dynamic_rotate %33 by %c127_i32_18 dim 1 : vector<2x128xf32>, i32 -> vector<2x128xf32>
    %37 = arith.cmpf ogt, %33, %35 : vector<2x128xf32>
    %38 = arith.cmpf ogt, %33, %36 : vector<2x128xf32>
    %39 = arith.andi %37, %38 : vector<2x128xi1>
    %c2_i32 = arith.constant 2 : i32
    %40 = vector.broadcast %c2_i32 : i32 to vector<2x128xi32>
    %41 = arith.cmpi sge, %14, %40 : vector<2x128xi32>
    %42 = arith.andi %39, %41 : vector<2x128xi1>
    %c30_i32 = arith.constant 30 : i32
    %43 = vector.broadcast %c30_i32 : i32 to vector<2x128xi32>
    %44 = arith.cmpi sle, %14, %43 : vector<2x128xi32>
    %45 = arith.andi %42, %44 : vector<2x128xi1>
    %46 = arith.extui %45 : vector<2x128xi1> to vector<2x128xi32>
    %47 = arith.sitofp %46 : vector<2x128xi32> to vector<2x128xf32>
    %c0_19 = arith.constant 0 : index
    %c0_20 = arith.constant 0 : index
    %48 = vector.load %arg5[%c0_19, %c0_20] : memref<2x128xf32, #tpu.memory_space<vmem>>, vector<2x128xf32>
    tpu.vector_store %arg5[%c0_19, %c0_20], %47 {strides = array<i32>} : memref<2x128xf32, #tpu.memory_space<vmem>>, vector<2x128xf32>,
    return
  }
  func.func @transform_0(%arg0: i32) -> (i32, i32, i32) {
    %c0_i32 = arith.constant 0 : i32
    %c0_i32_0 = arith.constant 0 : i32
    %c0_i32_1 = arith.constant 0 : i32
    return %arg0, %c0_i32, %c0_i32_0 : i32, i32, i32
  }
  func.func @transform_1(%arg0: i32) -> (i32, i32) {
    %c0_i32 = arith.constant 0 : i32
    %c0_i32_0 = arith.constant 0 : i32
    %c0_i32_1 = arith.constant 0 : i32
    return %c0_i32, %c0_i32_0 : i32, i32
  }
  func.func @transform_2(%arg0: i32) -> (i32, i32, i32) {
    %c0_i32 = arith.constant 0 : i32
    %c0_i32_0 = arith.constant 0 : i32
    %c0_i32_1 = arith.constant 0 : i32
    return %arg0, %c0_i32, %c0_i32_0 : i32, i32, i32
  }
  func.func @transform_3(%arg0: i32) -> (i32, i32) {
    %c0_i32 = arith.constant 0 : i32
    %c0_i32_0 = arith.constant 0 : i32
    return %arg0, %c0_i32 : i32, i32
  }
  func.func @transform_4(%arg0: i32) -> (i32, i32) {
    %c0_i32 = arith.constant 0 : i32
    %c0_i32_0 = arith.constant 0 : i32
    return %arg0, %c0_i32 : i32, i32
  }
}

</mosaic_0001>

<bundles_post_ra>
// kernel: tpu_custom_call.1
= control target key start
LH: loop header
LB: loop body
LE: loop exit
PB: predicated region body
PF: predicated region fallthrough
CT: control target
= control target key end

     0   :  { %10 = vsyncpa [#allocation3], 0  ;;  %s428_s0 = inlined_call_operand.hbm [shape: f32[2,4,64], index: 0, kind: input, shape index: {}]   ;;  %s429_s1 = inlined_call_operand.hbm [shape: f32[64,256], index: 1, kind: input, shape index: {}]   ;;  %s430_s2 = inlined_call_operand.hbm [shape: f32[2,4,128], index: 2, kind: output, shape index: {0}]   ;;  %s431_s3 = inlined_call_operand.hbm [shape: f32[2,128], index: 3, kind: output, shape index: {1}]   ;;  %s432_s4 = inlined_call_operand.hbm [shape: f32[2,128], index: 4, kind: output, shape index: {2}]  }
   0x1   :  { %11 = vsyncpa [#allocation6], 0 }
   0x2   :  { %12 = vsyncpa [#allocation4], 0 }
   0x3   :  { %13 = vsyncpa [#allocation9], 0  ;;  %s18_s17 = sshll.u32 %s428_s0, 4  ;;  %s370_s18 = smov [#allocation2]   ;;  %s19_s17 = int_to_ptr.hbm [resolvable:$true] %s18_s17 }
   0x4   :  { %s20_s19 = sshll.u32 %s370_s18, 4  ;;  %s31_s22 = sshll.u32 %s429_s1, 4  ;;  %s21_s19 = int_to_ptr.vmem [resolvable:$true] %s20_s19  ;;  %s32_s22 = int_to_ptr.hbm [resolvable:$true] %s31_s22 }
   0x5   :  { %s371_s23 = smov 64   ;;  %s372_s24 = smov 4  }
   0x6   :  { %26 = dma.hbm_to_vmem [thread:$0]  %s19_s17, 128, %s21_s19, [#allocation3], %s371_s23, %s371_s23, %s372_s24  }
   0x7   :  { %s373_s25 = smov [#allocation5]   ;;  %s374_s27 = smov 256  }
   0x8   :  { %s33_s26 = sshll.u32 %s373_s25, 4  ;;  %s375_s0 = smov 16   ;;  %s34_s26 = int_to_ptr.vmem [resolvable:$true] %s33_s26 }
   0x9   :  { %39 = dma.hbm_to_vmem [thread:$0]  %s32_s22, 2048, %s34_s26, [#allocation6], %s374_s27, %s374_s27, %s375_s0  }
   0xa   :  { %362 = dma.done.wait [#allocation3], 128  }
   0xb   :  { %363 = vsyncadd [#allocation3], 4294967168 }
   0xc   :  { %364 = dma.done.wait [#allocation6], 2048  }
   0xd   :  { %365 = vsyncadd [#allocation6], 4294965248  ;;  %v64_v0 = vld [vmem:[#allocation5 + $0x70] sm:$0xff]  ;;  %v65_v1 = vld [vmem:[#allocation5 + $0x78] sm:$0xff]  ;;  %vm72_vm0 = vcmask 523264   ;;  %vm123_vm1 = vcmask 1043456   ;;  %v140_v30 = vlaneseq }
   0xe   :  { %v62_v2 = vld [vmem:[#allocation5 + $0x60] sm:$0xff]  ;;  %83 = vmatpush.msra.mxu0 %v64_v0  ;;  %103 = vmatpush.msra.mxu1 %v65_v1  ;;  %v63_v3 = vld [vmem:[#allocation5 + $0x68] sm:$0xff]  ;;  %v60_v4 = vld [vmem:[#allocation5 + $0x50] sm:$0xff]  ;;  %vm147_vm4 = vcmask 1041409   ;;  %s376_s1 = smov 1   ;;  %s377_s28 = smov 127  }
   0xf   :  { %v61_v5 = vld [vmem:[#allocation5 + $0x58] sm:$0xff]  ;;  %v58_v6 = vld [vmem:[#allocation5 + $0x40] sm:$0xff]  ;;  %v59_v7 = vld [vmem:[#allocation5 + $0x48] sm:$0xff]  ;;  %v141_v35 = vand.u32 127, %v140_v30  ;;  %s378_s29 = smov [#allocation8]   ;;  %s196_s7 = sshll.u32 %s431_s3, 4  ;;  %s197_s7 = int_to_ptr.hbm [resolvable:$true] %s196_s7 }
  0x10   :  { %84 = vmatpush.msra.mxu0 %v62_v2  ;;  %104 = vmatpush.msra.mxu1 %v63_v3  ;;  %v48_v8 = vld [vmem:[#allocation2] sm:$0xf]  ;;  %v49_v9 = vld [vmem:[#allocation2 + $0x4] sm:$0xf]  ;;  %v56_v10 = vld [vmem:[#allocation5 + $0x30] sm:$0xff]  ;;  %s194_s30 = sshll.u32 %s378_s29, 4  ;;  %s195_s30 = int_to_ptr.vmem [resolvable:$true] %s194_s30 }
  0x11   :  { %v57_v11 = vld [vmem:[#allocation5 + $0x38] sm:$0xff]  ;;  %68 = vst [vmem:[#allocation1] ss:$2 sm:$0xff] %v48_v8  ;;  %v54_v12 = vld [vmem:[#allocation5 + $0x20] sm:$0xff]  ;;  %v55_v13 = vld [vmem:[#allocation5 + $0x28] sm:$0xff]  ;;  %vm142_vm2 = vcmp.ge.s32.totalorder %v141_v35, 1 }
  0x12   :  { %85 = vmatpush.msra.mxu0 %v60_v4  ;;  %105 = vmatpush.msra.mxu1 %v61_v5  ;;  %70 = vst [vmem:[#allocation1 + $0x1] ss:$2 sm:$0xff] %v49_v9  ;;  %v52_v14 = vld [vmem:[#allocation5 + $0x10] sm:$0xff]  ;;  %v53_v15 = vld [vmem:[#allocation5 + $0x18] sm:$0xff]  ;;  %v50_v16 = vld [vmem:[#allocation5] sm:$0xff]  ;;  %vm143_vm3 = vcmp.le.s32.totalorder %v141_v35, 31 }
  0x13   :  { %v51_v17 = vld [vmem:[#allocation5 + $0x8] sm:$0xff]  ;;  %vm144_vm5 = vmand %vm142_vm2, %vm143_vm3  ;;  %s182_s10 = sshll.u32 %s430_s2, 4  ;;  %s379_s11 = smov [#allocation7]   ;;  %vm169_vm6 = vcmp.ge.s32.totalorder %v141_v35, 2  ;;  %vm171_vm8 = vcmp.le.s32.totalorder %v141_v35, 30  ;;  %v381_v54 = vmov 0.0   ;;  %s183_s10 = int_to_ptr.hbm [resolvable:$true] %s182_s10 }
  0x14   :  { %86 = vmatpush.msra.mxu0 %v58_v6  ;;  %106 = vmatpush.msra.mxu1 %v59_v7  ;;  %s180_s12 = sshll.u32 %s379_s11, 4  ;;  %s380_s3 = smov [#allocation10]   ;;  %s181_s12 = int_to_ptr.vmem [resolvable:$true] %s180_s12 }
  0x15   :  { %s205_s13 = sshll.u32 %s380_s3, 4  ;;  %s207_s15 = sshll.u32 %s432_s4, 4  ;;  %s206_s13 = int_to_ptr.vmem [resolvable:$true] %s205_s13  ;;  %s208_s15 = int_to_ptr.hbm [resolvable:$true] %s207_s15 }
  0x16   :  { %87 = vmatpush.msra.mxu0 %v56_v10  ;;  %107 = vmatpush.msra.mxu1 %v57_v11 }
  0x18   :  { %88 = vmatpush.msra.mxu0 %v54_v12  ;;  %108 = vmatpush.msra.mxu1 %v55_v13 }
  0x19   :  { %v71_v18 = vld.sshfl [vmem:[#allocation1] sm:$0xff pattern:$0x75316420] }
  0x1a   :  { %89 = vmatpush.msra.mxu0 %v52_v14  ;;  %109 = vmatpush.msra.mxu1 %v53_v15 }
  0x1c   :  { %90 = vmatpush.msra.mxu0 %v50_v16  ;;  %110 = vmatpush.msra.mxu1 %v51_v17 }
  0x1d   :  { %227 = vmatmul.msk.f32.vlgmr.msra.gmra.mxu0 %vm72_vm0, %v71_v18  ;;  %228 = vmatmul.msk.f32.vlgmr.msra.gmra.mxu1 %vm72_vm0, %v71_v18 }
  0x9a   :  { %v92_v19 = vpop.f32.mrf.mxu0  ;;  %v112_v20 = vpop.f32.mrf.mxu1 }
  0x9b   :  { %v115_v21 = vmul.f32 %v92_v19, %v92_v19  ;;  %v116_v22 = vmul.f32 %v112_v20, %v112_v20 }
  0x9d   :  { %v117_v23 = vadd.f32 %v116_v22, %v115_v21 }
  0x9f   :  { %v119_v24 = vrot.slane %v117_v23, 4  ;;  %v124_v25 = vsel %vm123_vm1, %v117_v23, 0.0  ;;  %121 = vst [vmem:[#allocation7] sm:$0xf] %v117_v23 }
  0xa0   :  { %v125_v26 = vrot.slane %v124_v25, 4 }
  0xa1   :  { %v131_v27 = vsel %vm123_vm1, %v119_v24, 0.0  ;;  %122 = vst [vmem:[#allocation7 + $0x4] sm:$0xf] %v119_v24 }
  0xa2   :  { %v126_v28 = vadd.f32 %v125_v26, %v124_v25  ;;  %v132_v29 = vrot.slane %v131_v27, 4  ;;  %188 = dma.vmem_to_hbm [thread:$0]  %s181_s12, 128, %s183_s10, [#allocation4], %s371_s23, %s371_s23, %s372_s24  }
  0xa4   :  { %v127_v31 = vrot.slane %v126_v28, 2  ;;  %v133_v32 = vadd.f32 %v132_v29, %v131_v27 }
  0xa6   :  { %v128_v33 = vadd.f32 %v127_v31, %v126_v28  ;;  %v134_v34 = vrot.slane %v133_v32, 2 }
  0xa8   :  { %v129_v36 = vrot.slane %v128_v33, 1  ;;  %v135_v37 = vadd.f32 %v134_v34, %v133_v32 }
  0xaa   :  { %v130_v38 = vadd.f32 %v129_v36, %v128_v33  ;;  %v136_v39 = vrot.slane %v135_v37, 1 }
  0xac   :  { %v137_v40 = vadd.f32 %v136_v39, %v135_v37  ;;  %v138_v41 = vmul.f32 0.25, %v130_v38 }
  0xae   :  { %v139_v42 = vmul.f32 0.25, %v137_v40 }
  0xb0   :  { %v148_v43 = vsel %vm147_vm4, %v139_v42, %v138_v41 }
  0xb1   :  { %v150_v44 = vsel %vm144_vm5, %v148_v43, 0.0 }
  0xb2   :  { %151 = vrot.lane.b32.xlu0 %v150_v44, %s376_s1  ;;  %v155_v47 = vmul.f32 0.36166447, %v150_v44 }
  0xba   :  { %157 = vrot.lane.b32.xlu0 %v150_v44, %s377_s28 }
 0x124   :  { %v152_v45 = vpop.permute.xlu0 %151 }
 0x125   :  { %v153_v46 = vmul.f32 0.3191678, %v152_v45 }
 0x127   :  { %v156_v49 = vadd.f32 %v155_v47, %v153_v46 }
 0x12c   :  { %v158_v48 = vpop.permute.xlu0 %157 }
 0x12d   :  { %v159_v50 = vmul.f32 0.3191678, %v158_v48 }
 0x12f   :  { %v160_v51 = vadd.f32 %v159_v50, %v156_v49 }
 0x131   :  { %161 = vst [vmem:[#allocation8] sm:$0x3] %v160_v51  ;;  %162 = vrot.lane.b32.xlu1 %v160_v51, %s376_s1 }
 0x132   :  { %199 = dma.vmem_to_hbm [thread:$0]  %s195_s30, 32, %s197_s7, [#allocation9]  }
 0x139   :  { %164 = vrot.lane.b32.xlu1 %v160_v51, %s377_s28 }
 0x1a3   :  { %v163_v52 = vpop.permute.xlu1 %162 }
 0x1a4   :  { %vm166_vm7 = vcmp.gt.f32.partialorder %v160_v51, %v163_v52 }
 0x1ab   :  { %v165_v53 = vpop.permute.xlu1 %164 }
 0x1ac   :  { %vm167_vm9 = vcmp.gt.f32.partialorder %v160_v51, %v165_v53 }
 0x1ad   :  { %vm168_vm10 = vmand %vm166_vm7, %vm167_vm9 }
 0x1ae   :  { %vm170_vm11 = vmand %vm168_vm10, %vm169_vm6 }
 0x1af   :  { %vm172_vm12 = vmand %vm170_vm11, %vm171_vm8 }
 0x1b0   :  { %v229_v55 = vsel %vm172_vm12, 1.0, %v381_v54 }
 0x1b1   :  { %175 = vst [vmem:[#allocation10] sm:$0x3] %v229_v55 }
 0x1b2   :  { %210 = dma.vmem_to_hbm [thread:$0]  %s206_s13, 32, %s208_s15, [#allocation9]  }
 0x1b3   :  { %366 = dma.done.wait [#allocation4], 128  }
 0x1b4   :  { %367 = vsyncadd [#allocation4], 4294967168 }
 0x1b5   :  { %368 = dma.done.wait [#allocation9], 64  }
 0x1b6   :  { %369 = vsyncadd [#allocation9], 4294967232 }
 0x1b7   :  { %223 = vsyncpa [#allocation3], 1 }
 0x1b8   :  { %224 = vsyncpa [#allocation6], 1 }
 0x1b9   :  { %225 = vsyncpa [#allocation4], 1 }
 0x1ba   :  { %226 = vsyncpa [#allocation9], 1 }

</bundles_post_ra>
